<compile_context>
chip_gen: v7x
topology: tpu7x:2x2x1
jax: 0.10.0
libtpu: 0.0.40
codegen_flags: <defaults>
</compile_context>

<pallas_src>
import functools

import jax
import jax.numpy as jnp
from jax import lax
from jax.experimental import pallas as pl
from jax.experimental.pallas import tpu as pltpu


# Practical SMEM budget for this kernel's operands.  A 1-D array of E elements
# (4-byte dtype) pads to next_pow2(4*E) bytes in SMEM.
_SMEM_BUDGET_BYTES = 1 << 20   # ~1 MiB practical ceiling
_FULL_UNROLL_MAX = 512         # 3 scalar ops / element -> full unroll is tiny code


def _smem_padded_bytes(num_elems: int) -> int:
    """Padded SMEM footprint of a 1-D 4-byte-dtype array of `num_elems`."""
    return pl.next_power_of_2(max(4 * num_elems, 4))


def _unroll(n: int):
    """Fully unroll short scalar loops so the LLO scheduler can pack both
    scalar VLIW slots across the dependent sld->sld->sst chains."""
    return True if n <= _FULL_UNROLL_MAX else 8


def _item_bias_gather_kernel(ids_ref, table_ref, pred_ref):
    """Scalar embedding gather, entirely in SMEM.

    ids_ref:   SMEM (B*C,) int32   flattened item ids
    table_ref: SMEM (N,)   float32 item_bias table (one float per item)
    pred_ref:  SMEM (B*C,) float32 gathered biases
    """
    n_items = table_ref.shape[0]   # static
    m = pred_ref.shape[0]          # static

    def body(i, carry):
        idx = ids_ref[i]
        # No-op in production; active only under pl.enable_debug_checks().
        pl.debug_check(jnp.logical_and(idx >= 0, idx < n_items),
                       "item_id out of range")
        pred_ref[i] = table_ref[idx]
        return carry

    lax.fori_loop(0, m, body, 0, unroll=_unroll(m))


def _item_bias_gather_bpr_kernel(ids_ref, table_ref, pred_ref, logits_ref, *,
                                 n_candidates: int):
    """Gather + fused pos-minus-neg BPR score diffs (launch-cost amortization).

    ids_ref:    SMEM (B*C,)       int32
    table_ref:  SMEM (N,)         float32
    pred_ref:   SMEM (B*C,)       float32  gathered biases
    logits_ref: SMEM (B*(C-1),)   float32  logits[b,j] = pred[b,0]-pred[b,1+j]
    """
    n_items = table_ref.shape[0]
    m = pred_ref.shape[0]
    n_neg = n_candidates - 1

    def gather_body(i, carry):
        idx = ids_ref[i]
        pl.debug_check(jnp.logical_and(idx >= 0, idx < n_items),
                       "item_id out of range")
        pred_ref[i] = table_ref[idx]
        return carry

    lax.fori_loop(0, m, gather_body, 0, unroll=_unroll(m))

    # Scalar-slot filler: the vector units are idle and the scalar slots have
    # huge slack at these sizes, so the extra subtracts are effectively free.
    def logit_body(i, carry):
        row = i // n_neg
        j = i - row * n_neg
        base = row * n_candidates
        logits_ref[i] = pred_ref[base] - pred_ref[base + 1 + j]
        return carry

    n_logits = logits_ref.shape[0]
    lax.fori_loop(0, n_logits, logit_body, 0, unroll=_unroll(n_logits))


def meta_model_forward(item_ids: jax.Array, item_bias: jax.Array, *,
                       fuse_bpr_logits: bool = False):
    """item_ids: [B, C] int; item_bias: [item_num, 1] f32.

    Returns prediction [B, C] f32 (== MetaModel.forward), and additionally the
    fused BPR score diffs [B, C-1] when fuse_bpr_logits=True.
    Callers should pass int32 ids / f32 table to avoid extra wrapper casts.
    """
    B, C = item_ids.shape
    n_items = item_bias.shape[0]
    m = B * C
    n_neg = C - 1

    # Trace-time conditional casts: no HLO emitted when dtypes already match.
    ids_flat = item_ids.reshape(-1)
    if ids_flat.dtype != jnp.int32:
        ids_flat = ids_flat.astype(jnp.int32)
    table_flat = item_bias.reshape(-1)
    if table_flat.dtype != jnp.float32:
        table_flat = table_flat.astype(jnp.float32)

    # ---- Static SMEM-capacity guard + dispatch --------------------------------
    smem_bytes = (_smem_padded_bytes(m) * 2            # ids + pred
                  + _smem_padded_bytes(n_items)        # bias table
                  + (_smem_padded_bytes(B * n_neg) if fuse_bpr_logits else 0))
    if smem_bytes > _SMEM_BUDGET_BYTES:
        # Large-catalog path: a native XLA gather is the right tool here
        # (review item 1a); avoids compiling an SMEM-overflowing kernel.
        # TODO(synk): lane-dense (ceil(N/128),128) VMEM Pallas gather (jnp.take
        # on the VMEM ref, vmem_limit_bytes budgeted for v7x) if this lookup
        # must stay fused inside a Pallas kernel at catalog scale.
        pred = jnp.take(table_flat, ids_flat, axis=0).reshape(B, -1)
        if fuse_bpr_logits:
            return pred, pred[:, :1] - pred[:, 1:]
        return pred

    smem = pltpu.MemorySpace.SMEM

    if not fuse_bpr_logits:
        cost = pl.CostEstimate(
            flops=0,                                   # pure gather: 0 FLOPs
            transcendentals=0,
            bytes_accessed=4 * (2 * m + n_items),
        )
        pred_flat = pl.pallas_call(
            _item_bias_gather_kernel,
            out_shape=jax.ShapeDtypeStruct((m,), jnp.float32),
            in_specs=[pl.BlockSpec(memory_space=smem),   # ids
                      pl.BlockSpec(memory_space=smem)],  # bias table
            out_specs=pl.BlockSpec(memory_space=smem),
            cost_estimate=cost,
        )(ids_flat, table_flat)
        # prediction.view(batch_size, -1)
        return pred_flat.reshape(B, -1)

    if C < 2:
        raise ValueError("fuse_bpr_logits=True requires >= 1 negative candidate")

    cost = pl.CostEstimate(
        flops=B * n_neg,                               # fused subtracts
        transcendentals=0,
        bytes_accessed=4 * (2 * m + n_items + B * n_neg),
    )
    pred_flat, logits_flat = pl.pallas_call(
        functools.partial(_item_bias_gather_bpr_kernel, n_candidates=C),
        out_shape=(jax.ShapeDtypeStruct((m,), jnp.float32),
                   jax.ShapeDtypeStruct((B * n_neg,), jnp.float32)),
        in_specs=[pl.BlockSpec(memory_space=smem),     # ids
                  pl.BlockSpec(memory_space=smem)],    # bias table
        out_specs=(pl.BlockSpec(memory_space=smem),
                   pl.BlockSpec(memory_space=smem)),
        cost_estimate=cost,
    )(ids_flat, table_flat)
    # TODO(synk): sigmoid/log of the full BPR loss stay outside the kernel
    # (scalar transcendentals in SMEM don't lower cleanly); only the
    # per-candidate score diffs are fused.
    return pred_flat.reshape(B, -1), logits_flat.reshape(B, n_neg)


if __name__ == "__main__":
    key = jax.random.PRNGKey(0)
    k_emb, k_ids = jax.random.split(key)

    # Small config consistent with the module: batch of 4, 1 pos + 7 neg
    # candidates per row, a catalog of 1000 items.
    item_num = 1000
    batch_size = 4
    num_neg = 7
    n_candidates = 1 + num_neg

    # item_bias ~ Embedding(item_num, 1), init N(0, 0.01) like init_weights.
    item_bias = 0.01 * jax.random.normal(k_emb, (item_num, 1), dtype=jnp.float32)

    # feed_dict['item_id']: integer item ids, shape [batch_size, n_candidates].
    item_ids = jax.random.randint(
        k_ids, (batch_size, n_candidates), minval=0, maxval=item_num,
        dtype=jnp.int32,
    )

    # Reference in plain JAX (embedding gather + view).
    ref_pred = item_bias[item_ids, 0].reshape(batch_size, -1)
    ref_logits = ref_pred[:, :1] - ref_pred[:, 1:]

    # 1) Plain forward (module semantics).
    pred = meta_model_forward(item_ids, item_bias)
    pred = jax.block_until_ready(pred)
    assert pred.shape == (batch_size, n_candidates)
    assert jnp.allclose(pred, ref_pred, atol=1e-6), "mismatch vs reference gather"

    # 2) Forward with fused BPR score diffs (launch-overhead amortization).
    pred2, logits = meta_model_forward(item_ids, item_bias, fuse_bpr_logits=True)
    pred2, logits = jax.block_until_ready((pred2, logits))
    assert pred2.shape == (batch_size, n_candidates)
    assert logits.shape == (batch_size, n_candidates - 1)
    assert jnp.allclose(pred2, ref_pred, atol=1e-6), "fused pred mismatch"
    assert jnp.allclose(logits, ref_logits, atol=1e-6), "fused logits mismatch"

    print("KERNEL_OK")
</pallas_src>

<mosaic_0001>
module attributes {stable_mosaic.version = 11 : i64} {
  func.func @_item_bias_gather_kernel(%arg0: memref<32xi32, #tpu.memory_space<smem>>, %arg1: memref<1000xf32, #tpu.memory_space<smem>>, %arg2: memref<32xf32, #tpu.memory_space<smem>>) attributes {dimension_semantics = [], scalar_prefetch = 0 : i64, scratch_operands = 0 : i64, tpu.core_type = #tpu.core_type<tc>} {
    %c0_i32 = arith.constant 0 : i32
    %0 = arith.index_cast %c0_i32 : i32 to index
    %1 = memref.load %arg0[%0] : memref<32xi32, #tpu.memory_space<smem>>
    %c0_i32_0 = arith.constant 0 : i32
    %2 = arith.cmpi sge, %1, %c0_i32_0 : i32
    %c1000_i32 = arith.constant 1000 : i32
    %3 = arith.cmpi slt, %1, %c1000_i32 : i32
    %4 = arith.andi %2, %3 : i1
    %true = arith.constant true
    %5 = arith.xori %4, %true : i1
    %false = arith.constant false
    %6 = arith.ori %false, %5 : i1
    %false_1 = arith.constant false
    %c1_i32 = arith.constant 1 : i32
    %c-1_i32 = arith.constant -1 : i32
    %7 = arith.select %false_1, %c-1_i32, %c1_i32 : i32
    %8 = arith.index_cast %1 : i32 to index
    %9 = memref.load %arg1[%8] : memref<1000xf32, #tpu.memory_space<smem>>
    %10 = arith.index_cast %c0_i32 : i32 to index
    %11 = memref.load %arg2[%10] : memref<32xf32, #tpu.memory_space<smem>>
    memref.store %9, %arg2[%10] : memref<32xf32, #tpu.memory_space<smem>>
    %c1_i32_2 = arith.constant 1 : i32
    %12 = arith.index_cast %c1_i32_2 : i32 to index
    %13 = memref.load %arg0[%12] : memref<32xi32, #tpu.memory_space<smem>>
    %c0_i32_3 = arith.constant 0 : i32
    %14 = arith.cmpi sge, %13, %c0_i32_3 : i32
    %c1000_i32_4 = arith.constant 1000 : i32
    %15 = arith.cmpi slt, %13, %c1000_i32_4 : i32
    %16 = arith.andi %14, %15 : i1
    %true_5 = arith.constant true
    %17 = arith.xori %16, %true_5 : i1
    %false_6 = arith.constant false
    %18 = arith.ori %false_6, %17 : i1
    %false_7 = arith.constant false
    %c1_i32_8 = arith.constant 1 : i32
    %c-1_i32_9 = arith.constant -1 : i32
    %19 = arith.select %false_7, %c-1_i32_9, %c1_i32_8 : i32
    %20 = arith.index_cast %13 : i32 to index
    %21 = memref.load %arg1[%20] : memref<1000xf32, #tpu.memory_space<smem>>
    %22 = arith.index_cast %c1_i32_2 : i32 to index
    %23 = memref.load %arg2[%22] : memref<32xf32, #tpu.memory_space<smem>>
    memref.store %21, %arg2[%22] : memref<32xf32, #tpu.memory_space<smem>>
    %c2_i32 = arith.constant 2 : i32
    %24 = arith.index_cast %c2_i32 : i32 to index
    %25 = memref.load %arg0[%24] : memref<32xi32, #tpu.memory_space<smem>>
    %c0_i32_10 = arith.constant 0 : i32
    %26 = arith.cmpi sge, %25, %c0_i32_10 : i32
    %c1000_i32_11 = arith.constant 1000 : i32
    %27 = arith.cmpi slt, %25, %c1000_i32_11 : i32
    %28 = arith.andi %26, %27 : i1
    %true_12 = arith.constant true
    %29 = arith.xori %28, %true_12 : i1
    %false_13 = arith.constant false
    %30 = arith.ori %false_13, %29 : i1
    %false_14 = arith.constant false
    %c1_i32_15 = arith.constant 1 : i32
    %c-1_i32_16 = arith.constant -1 : i32
    %31 = arith.select %false_14, %c-1_i32_16, %c1_i32_15 : i32
    %32 = arith.index_cast %25 : i32 to index
    %33 = memref.load %arg1[%32] : memref<1000xf32, #tpu.memory_space<smem>>
    %34 = arith.index_cast %c2_i32 : i32 to index
    %35 = memref.load %arg2[%34] : memref<32xf32, #tpu.memory_space<smem>>
    memref.store %33, %arg2[%34] : memref<32xf32, #tpu.memory_space<smem>>
    %c3_i32 = arith.constant 3 : i32
    %36 = arith.index_cast %c3_i32 : i32 to index
    %37 = memref.load %arg0[%36] : memref<32xi32, #tpu.memory_space<smem>>
    %c0_i32_17 = arith.constant 0 : i32
    %38 = arith.cmpi sge, %37, %c0_i32_17 : i32
    %c1000_i32_18 = arith.constant 1000 : i32
    %39 = arith.cmpi slt, %37, %c1000_i32_18 : i32
    %40 = arith.andi %38, %39 : i1
    %true_19 = arith.constant true
    %41 = arith.xori %40, %true_19 : i1
    %false_20 = arith.constant false
    %42 = arith.ori %false_20, %41 : i1
    %false_21 = arith.constant false
    %c1_i32_22 = arith.constant 1 : i32
    %c-1_i32_23 = arith.constant -1 : i32
    %43 = arith.select %false_21, %c-1_i32_23, %c1_i32_22 : i32
    %44 = arith.index_cast %37 : i32 to index
    %45 = memref.load %arg1[%44] : memref<1000xf32, #tpu.memory_space<smem>>
    %46 = arith.index_cast %c3_i32 : i32 to index
    %47 = memref.load %arg2[%46] : memref<32xf32, #tpu.memory_space<smem>>
    memref.store %45, %arg2[%46] : memref<32xf32, #tpu.memory_space<smem>>
    %c4_i32 = arith.constant 4 : i32
    %48 = arith.index_cast %c4_i32 : i32 to index
    %49 = memref.load %arg0[%48] : memref<32xi32, #tpu.memory_space<smem>>
    %c0_i32_24 = arith.constant 0 : i32
    %50 = arith.cmpi sge, %49, %c0_i32_24 : i32
    %c1000_i32_25 = arith.constant 1000 : i32
    %51 = arith.cmpi slt, %49, %c1000_i32_25 : i32
    %52 = arith.andi %50, %51 : i1
    %true_26 = arith.constant true
    %53 = arith.xori %52, %true_26 : i1
    %false_27 = arith.constant false
    %54 = arith.ori %false_27, %53 : i1
    %false_28 = arith.constant false
    %c1_i32_29 = arith.constant 1 : i32
    %c-1_i32_30 = arith.constant -1 : i32
    %55 = arith.select %false_28, %c-1_i32_30, %c1_i32_29 : i32
    %56 = arith.index_cast %49 : i32 to index
    %57 = memref.load %arg1[%56] : memref<1000xf32, #tpu.memory_space<smem>>
    %58 = arith.index_cast %c4_i32 : i32 to index
    %59 = memref.load %arg2[%58] : memref<32xf32, #tpu.memory_space<smem>>
    memref.store %57, %arg2[%58] : memref<32xf32, #tpu.memory_space<smem>>
    %c5_i32 = arith.constant 5 : i32
    %60 = arith.index_cast %c5_i32 : i32 to index
    %61 = memref.load %arg0[%60] : memref<32xi32, #tpu.memory_space<smem>>
    %c0_i32_31 = arith.constant 0 : i32
    %62 = arith.cmpi sge, %61, %c0_i32_31 : i32
    %c1000_i32_32 = arith.constant 1000 : i32
    %63 = arith.cmpi slt, %61, %c1000_i32_32 : i32
    %64 = arith.andi %62, %63 : i1
    %true_33 = arith.constant true
    %65 = arith.xori %64, %true_33 : i1
    %false_34 = arith.constant false
    %66 = arith.ori %false_34, %65 : i1
    %false_35 = arith.constant false
    %c1_i32_36 = arith.constant 1 : i32
    %c-1_i32_37 = arith.constant -1 : i32
    %67 = arith.select %false_35, %c-1_i32_37, %c1_i32_36 : i32
    %68 = arith.index_cast %61 : i32 to index
    %69 = memref.load %arg1[%68] : memref<1000xf32, #tpu.memory_space<smem>>
    %70 = arith.index_cast %c5_i32 : i32 to index
    %71 = memref.load %arg2[%70] : memref<32xf32, #tpu.memory_space<smem>>
    memref.store %69, %arg2[%70] : memref<32xf32, #tpu.memory_space<smem>>
    %c6_i32 = arith.constant 6 : i32
    %72 = arith.index_cast %c6_i32 : i32 to index
    %73 = memref.load %arg0[%72] : memref<32xi32, #tpu.memory_space<smem>>
    %c0_i32_38 = arith.constant 0 : i32
    %74 = arith.cmpi sge, %73, %c0_i32_38 : i32
    %c1000_i32_39 = arith.constant 1000 : i32
    %75 = arith.cmpi slt, %73, %c1000_i32_39 : i32
    %76 = arith.andi %74, %75 : i1
    %true_40 = arith.constant true
    %77 = arith.xori %76, %true_40 : i1
    %false_41 = arith.constant false
    %78 = arith.ori %false_41, %77 : i1
    %false_42 = arith.constant false
    %c1_i32_43 = arith.constant 1 : i32
    %c-1_i32_44 = arith.constant -1 : i32
    %79 = arith.select %false_42, %c-1_i32_44, %c1_i32_43 : i32
    %80 = arith.index_cast %73 : i32 to index
    %81 = memref.load %arg1[%80] : memref<1000xf32, #tpu.memory_space<smem>>
    %82 = arith.index_cast %c6_i32 : i32 to index
    %83 = memref.load %arg2[%82] : memref<32xf32, #tpu.memory_space<smem>>
    memref.store %81, %arg2[%82] : memref<32xf32, #tpu.memory_space<smem>>
    %c7_i32 = arith.constant 7 : i32
    %84 = arith.index_cast %c7_i32 : i32 to index
    %85 = memref.load %arg0[%84] : memref<32xi32, #tpu.memory_space<smem>>
    %c0_i32_45 = arith.constant 0 : i32
    %86 = arith.cmpi sge, %85, %c0_i32_45 : i32
    %c1000_i32_46 = arith.constant 1000 : i32
    %87 = arith.cmpi slt, %85, %c1000_i32_46 : i32
    %88 = arith.andi %86, %87 : i1
    %true_47 = arith.constant true
    %89 = arith.xori %88, %true_47 : i1
    %false_48 = arith.constant false
    %90 = arith.ori %false_48, %89 : i1
    %false_49 = arith.constant false
    %c1_i32_50 = arith.constant 1 : i32
    %c-1_i32_51 = arith.constant -1 : i32
    %91 = arith.select %false_49, %c-1_i32_51, %c1_i32_50 : i32
    %92 = arith.index_cast %85 : i32 to index
    %93 = memref.load %arg1[%92] : memref<1000xf32, #tpu.memory_space<smem>>
    %94 = arith.index_cast %c7_i32 : i32 to index
    %95 = memref.load %arg2[%94] : memref<32xf32, #tpu.memory_space<smem>>
    memref.store %93, %arg2[%94] : memref<32xf32, #tpu.memory_space<smem>>
    %c8_i32 = arith.constant 8 : i32
    %96 = arith.index_cast %c8_i32 : i32 to index
    %97 = memref.load %arg0[%96] : memref<32xi32, #tpu.memory_space<smem>>
    %c0_i32_52 = arith.constant 0 : i32
    %98 = arith.cmpi sge, %97, %c0_i32_52 : i32
    %c1000_i32_53 = arith.constant 1000 : i32
    %99 = arith.cmpi slt, %97, %c1000_i32_53 : i32
    %100 = arith.andi %98, %99 : i1
    %true_54 = arith.constant true
    %101 = arith.xori %100, %true_54 : i1
    %false_55 = arith.constant false
    %102 = arith.ori %false_55, %101 : i1
    %false_56 = arith.constant false
    %c1_i32_57 = arith.constant 1 : i32
    %c-1_i32_58 = arith.constant -1 : i32
    %103 = arith.select %false_56, %c-1_i32_58, %c1_i32_57 : i32
    %104 = arith.index_cast %97 : i32 to index
    %105 = memref.load %arg1[%104] : memref<1000xf32, #tpu.memory_space<smem>>
    %106 = arith.index_cast %c8_i32 : i32 to index
    %107 = memref.load %arg2[%106] : memref<32xf32, #tpu.memory_space<smem>>
    memref.store %105, %arg2[%106] : memref<32xf32, #tpu.memory_space<smem>>
    %c9_i32 = arith.constant 9 : i32
    %108 = arith.index_cast %c9_i32 : i32 to index
    %109 = memref.load %arg0[%108] : memref<32xi32, #tpu.memory_space<smem>>
    %c0_i32_59 = arith.constant 0 : i32
    %110 = arith.cmpi sge, %109, %c0_i32_59 : i32
    %c1000_i32_60 = arith.constant 1000 : i32
    %111 = arith.cmpi slt, %109, %c1000_i32_60 : i32
    %112 = arith.andi %110, %111 : i1
    %true_61 = arith.constant true
    %113 = arith.xori %112, %true_61 : i1
    %false_62 = arith.constant false
    %114 = arith.ori %false_62, %113 : i1
    %false_63 = arith.constant false
    %c1_i32_64 = arith.constant 1 : i32
    %c-1_i32_65 = arith.constant -1 : i32
    %115 = arith.select %false_63, %c-1_i32_65, %c1_i32_64 : i32
    %116 = arith.index_cast %109 : i32 to index
    %117 = memref.load %arg1[%116] : memref<1000xf32, #tpu.memory_space<smem>>
    %118 = arith.index_cast %c9_i32 : i32 to index
    %119 = memref.load %arg2[%118] : memref<32xf32, #tpu.memory_space<smem>>
    memref.store %117, %arg2[%118] : memref<32xf32, #tpu.memory_space<smem>>
    %c10_i32 = arith.constant 10 : i32
    %120 = arith.index_cast %c10_i32 : i32 to index
    %121 = memref.load %arg0[%120] : memref<32xi32, #tpu.memory_space<smem>>
    %c0_i32_66 = arith.constant 0 : i32
    %122 = arith.cmpi sge, %121, %c0_i32_66 : i32
    %c1000_i32_67 = arith.constant 1000 : i32
    %123 = arith.cmpi slt, %121, %c1000_i32_67 : i32
    %124 = arith.andi %122, %123 : i1
    %true_68 = arith.constant true
    %125 = arith.xori %124, %true_68 : i1
    %false_69 = arith.constant false
    %126 = arith.ori %false_69, %125 : i1
    %false_70 = arith.constant false
    %c1_i32_71 = arith.constant 1 : i32
    %c-1_i32_72 = arith.constant -1 : i32
    %127 = arith.select %false_70, %c-1_i32_72, %c1_i32_71 : i32
    %128 = arith.index_cast %121 : i32 to index
    %129 = memref.load %arg1[%128] : memref<1000xf32, #tpu.memory_space<smem>>
    %130 = arith.index_cast %c10_i32 : i32 to index
    %131 = memref.load %arg2[%130] : memref<32xf32, #tpu.memory_space<smem>>
    memref.store %129, %arg2[%130] : memref<32xf32, #tpu.memory_space<smem>>
    %c11_i32 = arith.constant 11 : i32
    %132 = arith.index_cast %c11_i32 : i32 to index
    %133 = memref.load %arg0[%132] : memref<32xi32, #tpu.memory_space<smem>>
    %c0_i32_73 = arith.constant 0 : i32
    %134 = arith.cmpi sge, %133, %c0_i32_73 : i32
    %c1000_i32_74 = arith.constant 1000 : i32
    %135 = arith.cmpi slt, %133, %c1000_i32_74 : i32
    %136 = arith.andi %134, %135 : i1
    %true_75 = arith.constant true
    %137 = arith.xori %136, %true_75 : i1
    %false_76 = arith.constant false
    %138 = arith.ori %false_76, %137 : i1
    %false_77 = arith.constant false
    %c1_i32_78 = arith.constant 1 : i32
    %c-1_i32_79 = arith.constant -1 : i32
    %139 = arith.select %false_77, %c-1_i32_79, %c1_i32_78 : i32
    %140 = arith.index_cast %133 : i32 to index
    %141 = memref.load %arg1[%140] : memref<1000xf32, #tpu.memory_space<smem>>
    %142 = arith.index_cast %c11_i32 : i32 to index
    %143 = memref.load %arg2[%142] : memref<32xf32, #tpu.memory_space<smem>>
    memref.store %141, %arg2[%142] : memref<32xf32, #tpu.memory_space<smem>>
    %c12_i32 = arith.constant 12 : i32
    %144 = arith.index_cast %c12_i32 : i32 to index
    %145 = memref.load %arg0[%144] : memref<32xi32, #tpu.memory_space<smem>>
    %c0_i32_80 = arith.constant 0 : i32
    %146 = arith.cmpi sge, %145, %c0_i32_80 : i32
    %c1000_i32_81 = arith.constant 1000 : i32
    %147 = arith.cmpi slt, %145, %c1000_i32_81 : i32
    %148 = arith.andi %146, %147 : i1
    %true_82 = arith.constant true
    %149 = arith.xori %148, %true_82 : i1
    %false_83 = arith.constant false
    %150 = arith.ori %false_83, %149 : i1
    %false_84 = arith.constant false
    %c1_i32_85 = arith.constant 1 : i32
    %c-1_i32_86 = arith.constant -1 : i32
    %151 = arith.select %false_84, %c-1_i32_86, %c1_i32_85 : i32
    %152 = arith.index_cast %145 : i32 to index
    %153 = memref.load %arg1[%152] : memref<1000xf32, #tpu.memory_space<smem>>
    %154 = arith.index_cast %c12_i32 : i32 to index
    %155 = memref.load %arg2[%154] : memref<32xf32, #tpu.memory_space<smem>>
    memref.store %153, %arg2[%154] : memref<32xf32, #tpu.memory_space<smem>>
    %c13_i32 = arith.constant 13 : i32
    %156 = arith.index_cast %c13_i32 : i32 to index
    %157 = memref.load %arg0[%156] : memref<32xi32, #tpu.memory_space<smem>>
    %c0_i32_87 = arith.constant 0 : i32
    %158 = arith.cmpi sge, %157, %c0_i32_87 : i32
    %c1000_i32_88 = arith.constant 1000 : i32
    %159 = arith.cmpi slt, %157, %c1000_i32_88 : i32
    %160 = arith.andi %158, %159 : i1
    %true_89 = arith.constant true
    %161 = arith.xori %160, %true_89 : i1
    %false_90 = arith.constant false
    %162 = arith.ori %false_90, %161 : i1
    %false_91 = arith.constant false
    %c1_i32_92 = arith.constant 1 : i32
    %c-1_i32_93 = arith.constant -1 : i32
    %163 = arith.select %false_91, %c-1_i32_93, %c1_i32_92 : i32
    %164 = arith.index_cast %157 : i32 to index
    %165 = memref.load %arg1[%164] : memref<1000xf32, #tpu.memory_space<smem>>
    %166 = arith.index_cast %c13_i32 : i32 to index
    %167 = memref.load %arg2[%166] : memref<32xf32, #tpu.memory_space<smem>>
    memref.store %165, %arg2[%166] : memref<32xf32, #tpu.memory_space<smem>>
    %c14_i32 = arith.constant 14 : i32
    %168 = arith.index_cast %c14_i32 : i32 to index
    %169 = memref.load %arg0[%168] : memref<32xi32, #tpu.memory_space<smem>>
    %c0_i32_94 = arith.constant 0 : i32
    %170 = arith.cmpi sge, %169, %c0_i32_94 : i32
    %c1000_i32_95 = arith.constant 1000 : i32
    %171 = arith.cmpi slt, %169, %c1000_i32_95 : i32
    %172 = arith.andi %170, %171 : i1
    %true_96 = arith.constant true
    %173 = arith.xori %172, %true_96 : i1
    %false_97 = arith.constant false
    %174 = arith.ori %false_97, %173 : i1
    %false_98 = arith.constant false
    %c1_i32_99 = arith.constant 1 : i32
    %c-1_i32_100 = arith.constant -1 : i32
    %175 = arith.select %false_98, %c-1_i32_100, %c1_i32_99 : i32
    %176 = arith.index_cast %169 : i32 to index
    %177 = memref.load %arg1[%176] : memref<1000xf32, #tpu.memory_space<smem>>
    %178 = arith.index_cast %c14_i32 : i32 to index
    %179 = memref.load %arg2[%178] : memref<32xf32, #tpu.memory_space<smem>>
    memref.store %177, %arg2[%178] : memref<32xf32, #tpu.memory_space<smem>>
    %c15_i32 = arith.constant 15 : i32
    %180 = arith.index_cast %c15_i32 : i32 to index
    %181 = memref.load %arg0[%180] : memref<32xi32, #tpu.memory_space<smem>>
    %c0_i32_101 = arith.constant 0 : i32
    %182 = arith.cmpi sge, %181, %c0_i32_101 : i32
    %c1000_i32_102 = arith.constant 1000 : i32
    %183 = arith.cmpi slt, %181, %c1000_i32_102 : i32
    %184 = arith.andi %182, %183 : i1
    %true_103 = arith.constant true
    %185 = arith.xori %184, %true_103 : i1
    %false_104 = arith.constant false
    %186 = arith.ori %false_104, %185 : i1
    %false_105 = arith.constant false
    %c1_i32_106 = arith.constant 1 : i32
    %c-1_i32_107 = arith.constant -1 : i32
    %187 = arith.select %false_105, %c-1_i32_107, %c1_i32_106 : i32
    %188 = arith.index_cast %181 : i32 to index
    %189 = memref.load %arg1[%188] : memref<1000xf32, #tpu.memory_space<smem>>
    %190 = arith.index_cast %c15_i32 : i32 to index
    %191 = memref.load %arg2[%190] : memref<32xf32, #tpu.memory_space<smem>>
    memref.store %189, %arg2[%190] : memref<32xf32, #tpu.memory_space<smem>>
    %c16_i32 = arith.constant 16 : i32
    %192 = arith.index_cast %c16_i32 : i32 to index
    %193 = memref.load %arg0[%192] : memref<32xi32, #tpu.memory_space<smem>>
    %c0_i32_108 = arith.constant 0 : i32
    %194 = arith.cmpi sge, %193, %c0_i32_108 : i32
    %c1000_i32_109 = arith.constant 1000 : i32
    %195 = arith.cmpi slt, %193, %c1000_i32_109 : i32
    %196 = arith.andi %194, %195 : i1
    %true_110 = arith.constant true
    %197 = arith.xori %196, %true_110 : i1
    %false_111 = arith.constant false
    %198 = arith.ori %false_111, %197 : i1
    %false_112 = arith.constant false
    %c1_i32_113 = arith.constant 1 : i32
    %c-1_i32_114 = arith.constant -1 : i32
    %199 = arith.select %false_112, %c-1_i32_114, %c1_i32_113 : i32
    %200 = arith.index_cast %193 : i32 to index
    %201 = memref.load %arg1[%200] : memref<1000xf32, #tpu.memory_space<smem>>
    %202 = arith.index_cast %c16_i32 : i32 to index
    %203 = memref.load %arg2[%202] : memref<32xf32, #tpu.memory_space<smem>>
    memref.store %201, %arg2[%202] : memref<32xf32, #tpu.memory_space<smem>>
    %c17_i32 = arith.constant 17 : i32
    %204 = arith.index_cast %c17_i32 : i32 to index
    %205 = memref.load %arg0[%204] : memref<32xi32, #tpu.memory_space<smem>>
    %c0_i32_115 = arith.constant 0 : i32
    %206 = arith.cmpi sge, %205, %c0_i32_115 : i32
    %c1000_i32_116 = arith.constant 1000 : i32
    %207 = arith.cmpi slt, %205, %c1000_i32_116 : i32
    %208 = arith.andi %206, %207 : i1
    %true_117 = arith.constant true
    %209 = arith.xori %208, %true_117 : i1
    %false_118 = arith.constant false
    %210 = arith.ori %false_118, %209 : i1
    %false_119 = arith.constant false
    %c1_i32_120 = arith.constant 1 : i32
    %c-1_i32_121 = arith.constant -1 : i32
    %211 = arith.select %false_119, %c-1_i32_121, %c1_i32_120 : i32
    %212 = arith.index_cast %205 : i32 to index
    %213 = memref.load %arg1[%212] : memref<1000xf32, #tpu.memory_space<smem>>
    %214 = arith.index_cast %c17_i32 : i32 to index
    %215 = memref.load %arg2[%214] : memref<32xf32, #tpu.memory_space<smem>>
    memref.store %213, %arg2[%214] : memref<32xf32, #tpu.memory_space<smem>>
    %c18_i32 = arith.constant 18 : i32
    %216 = arith.index_cast %c18_i32 : i32 to index
    %217 = memref.load %arg0[%216] : memref<32xi32, #tpu.memory_space<smem>>
    %c0_i32_122 = arith.constant 0 : i32
    %218 = arith.cmpi sge, %217, %c0_i32_122 : i32
    %c1000_i32_123 = arith.constant 1000 : i32
    %219 = arith.cmpi slt, %217, %c1000_i32_123 : i32
    %220 = arith.andi %218, %219 : i1
    %true_124 = arith.constant true
    %221 = arith.xori %220, %true_124 : i1
    %false_125 = arith.constant false
    %222 = arith.ori %false_125, %221 : i1
    %false_126 = arith.constant false
    %c1_i32_127 = arith.constant 1 : i32
    %c-1_i32_128 = arith.constant -1 : i32
    %223 = arith.select %false_126, %c-1_i32_128, %c1_i32_127 : i32
    %224 = arith.index_cast %217 : i32 to index
    %225 = memref.load %arg1[%224] : memref<1000xf32, #tpu.memory_space<smem>>
    %226 = arith.index_cast %c18_i32 : i32 to index
    %227 = memref.load %arg2[%226] : memref<32xf32, #tpu.memory_space<smem>>
    memref.store %225, %arg2[%226] : memref<32xf32, #tpu.memory_space<smem>>
    %c19_i32 = arith.constant 19 : i32
    %228 = arith.index_cast %c19_i32 : i32 to index
    %229 = memref.load %arg0[%228] : memref<32xi32, #tpu.memory_space<smem>>
    %c0_i32_129 = arith.constant 0 : i32
    %230 = arith.cmpi sge, %229, %c0_i32_129 : i32
    %c1000_i32_130 = arith.constant 1000 : i32
    %231 = arith.cmpi slt, %229, %c1000_i32_130 : i32
    %232 = arith.andi %230, %231 : i1
    %true_131 = arith.constant true
    %233 = arith.xori %232, %true_131 : i1
    %false_132 = arith.constant false
    %234 = arith.ori %false_132, %233 : i1
    %false_133 = arith.constant false
    %c1_i32_134 = arith.constant 1 : i32
    %c-1_i32_135 = arith.constant -1 : i32
    %235 = arith.select %false_133, %c-1_i32_135, %c1_i32_134 : i32
    %236 = arith.index_cast %229 : i32 to index
    %237 = memref.load %arg1[%236] : memref<1000xf32, #tpu.memory_space<smem>>
    %238 = arith.index_cast %c19_i32 : i32 to index
    %239 = memref.load %arg2[%238] : memref<32xf32, #tpu.memory_space<smem>>
    memref.store %237, %arg2[%238] : memref<32xf32, #tpu.memory_space<smem>>
    %c20_i32 = arith.constant 20 : i32
    %240 = arith.index_cast %c20_i32 : i32 to index
    %241 = memref.load %arg0[%240] : memref<32xi32, #tpu.memory_space<smem>>
    %c0_i32_136 = arith.constant 0 : i32
    %242 = arith.cmpi sge, %241, %c0_i32_136 : i32
    %c1000_i32_137 = arith.constant 1000 : i32
    %243 = arith.cmpi slt, %241, %c1000_i32_137 : i32
    %244 = arith.andi %242, %243 : i1
    %true_138 = arith.constant true
    %245 = arith.xori %244, %true_138 : i1
    %false_139 = arith.constant false
    %246 = arith.ori %false_139, %245 : i1
    %false_140 = arith.constant false
    %c1_i32_141 = arith.constant 1 : i32
    %c-1_i32_142 = arith.constant -1 : i32
    %247 = arith.select %false_140, %c-1_i32_142, %c1_i32_141 : i32
    %248 = arith.index_cast %241 : i32 to index
    %249 = memref.load %arg1[%248] : memref<1000xf32, #tpu.memory_space<smem>>
    %250 = arith.index_cast %c20_i32 : i32 to index
    %251 = memref.load %arg2[%250] : memref<32xf32, #tpu.memory_space<smem>>
    memref.store %249, %arg2[%250] : memref<32xf32, #tpu.memory_space<smem>>
    %c21_i32 = arith.constant 21 : i32
    %252 = arith.index_cast %c21_i32 : i32 to index
    %253 = memref.load %arg0[%252] : memref<32xi32, #tpu.memory_space<smem>>
    %c0_i32_143 = arith.constant 0 : i32
    %254 = arith.cmpi sge, %253, %c0_i32_143 : i32
    %c1000_i32_144 = arith.constant 1000 : i32
    %255 = arith.cmpi slt, %253, %c1000_i32_144 : i32
    %256 = arith.andi %254, %255 : i1
    %true_145 = arith.constant true
    %257 = arith.xori %256, %true_145 : i1
    %false_146 = arith.constant false
    %258 = arith.ori %false_146, %257 : i1
    %false_147 = arith.constant false
    %c1_i32_148 = arith.constant 1 : i32
    %c-1_i32_149 = arith.constant -1 : i32
    %259 = arith.select %false_147, %c-1_i32_149, %c1_i32_148 : i32
    %260 = arith.index_cast %253 : i32 to index
    %261 = memref.load %arg1[%260] : memref<1000xf32, #tpu.memory_space<smem>>
    %262 = arith.index_cast %c21_i32 : i32 to index
    %263 = memref.load %arg2[%262] : memref<32xf32, #tpu.memory_space<smem>>
    memref.store %261, %arg2[%262] : memref<32xf32, #tpu.memory_space<smem>>
    %c22_i32 = arith.constant 22 : i32
    %264 = arith.index_cast %c22_i32 : i32 to index
    %265 = memref.load %arg0[%264] : memref<32xi32, #tpu.memory_space<smem>>
    %c0_i32_150 = arith.constant 0 : i32
    %266 = arith.cmpi sge, %265, %c0_i32_150 : i32
    %c1000_i32_151 = arith.constant 1000 : i32
    %267 = arith.cmpi slt, %265, %c1000_i32_151 : i32
    %268 = arith.andi %266, %267 : i1
    %true_152 = arith.constant true
    %269 = arith.xori %268, %true_152 : i1
    %false_153 = arith.constant false
    %270 = arith.ori %false_153, %269 : i1
    %false_154 = arith.constant false
    %c1_i32_155 = arith.constant 1 : i32
    %c-1_i32_156 = arith.constant -1 : i32
    %271 = arith.select %false_154, %c-1_i32_156, %c1_i32_155 : i32
    %272 = arith.index_cast %265 : i32 to index
    %273 = memref.load %arg1[%272] : memref<1000xf32, #tpu.memory_space<smem>>
    %274 = arith.index_cast %c22_i32 : i32 to index
    %275 = memref.load %arg2[%274] : memref<32xf32, #tpu.memory_space<smem>>
    memref.store %273, %arg2[%274] : memref<32xf32, #tpu.memory_space<smem>>
    %c23_i32 = arith.constant 23 : i32
    %276 = arith.index_cast %c23_i32 : i32 to index
    %277 = memref.load %arg0[%276] : memref<32xi32, #tpu.memory_space<smem>>
    %c0_i32_157 = arith.constant 0 : i32
    %278 = arith.cmpi sge, %277, %c0_i32_157 : i32
    %c1000_i32_158 = arith.constant 1000 : i32
    %279 = arith.cmpi slt, %277, %c1000_i32_158 : i32
    %280 = arith.andi %278, %279 : i1
    %true_159 = arith.constant true
    %281 = arith.xori %280, %true_159 : i1
    %false_160 = arith.constant false
    %282 = arith.ori %false_160, %281 : i1
    %false_161 = arith.constant false
    %c1_i32_162 = arith.constant 1 : i32
    %c-1_i32_163 = arith.constant -1 : i32
    %283 = arith.select %false_161, %c-1_i32_163, %c1_i32_162 : i32
    %284 = arith.index_cast %277 : i32 to index
    %285 = memref.load %arg1[%284] : memref<1000xf32, #tpu.memory_space<smem>>
    %286 = arith.index_cast %c23_i32 : i32 to index
    %287 = memref.load %arg2[%286] : memref<32xf32, #tpu.memory_space<smem>>
    memref.store %285, %arg2[%286] : memref<32xf32, #tpu.memory_space<smem>>
    %c24_i32 = arith.constant 24 : i32
    %288 = arith.index_cast %c24_i32 : i32 to index
    %289 = memref.load %arg0[%288] : memref<32xi32, #tpu.memory_space<smem>>
    %c0_i32_164 = arith.constant 0 : i32
    %290 = arith.cmpi sge, %289, %c0_i32_164 : i32
    %c1000_i32_165 = arith.constant 1000 : i32
    %291 = arith.cmpi slt, %289, %c1000_i32_165 : i32
    %292 = arith.andi %290, %291 : i1
    %true_166 = arith.constant true
    %293 = arith.xori %292, %true_166 : i1
    %false_167 = arith.constant false
    %294 = arith.ori %false_167, %293 : i1
    %false_168 = arith.constant false
    %c1_i32_169 = arith.constant 1 : i32
    %c-1_i32_170 = arith.constant -1 : i32
    %295 = arith.select %false_168, %c-1_i32_170, %c1_i32_169 : i32
    %296 = arith.index_cast %289 : i32 to index
    %297 = memref.load %arg1[%296] : memref<1000xf32, #tpu.memory_space<smem>>
    %298 = arith.index_cast %c24_i32 : i32 to index
    %299 = memref.load %arg2[%298] : memref<32xf32, #tpu.memory_space<smem>>
    memref.store %297, %arg2[%298] : memref<32xf32, #tpu.memory_space<smem>>
    %c25_i32 = arith.constant 25 : i32
    %300 = arith.index_cast %c25_i32 : i32 to index
    %301 = memref.load %arg0[%300] : memref<32xi32, #tpu.memory_space<smem>>
    %c0_i32_171 = arith.constant 0 : i32
    %302 = arith.cmpi sge, %301, %c0_i32_171 : i32
    %c1000_i32_172 = arith.constant 1000 : i32
    %303 = arith.cmpi slt, %301, %c1000_i32_172 : i32
    %304 = arith.andi %302, %303 : i1
    %true_173 = arith.constant true
    %305 = arith.xori %304, %true_173 : i1
    %false_174 = arith.constant false
    %306 = arith.ori %false_174, %305 : i1
    %false_175 = arith.constant false
    %c1_i32_176 = arith.constant 1 : i32
    %c-1_i32_177 = arith.constant -1 : i32
    %307 = arith.select %false_175, %c-1_i32_177, %c1_i32_176 : i32
    %308 = arith.index_cast %301 : i32 to index
    %309 = memref.load %arg1[%308] : memref<1000xf32, #tpu.memory_space<smem>>
    %310 = arith.index_cast %c25_i32 : i32 to index
    %311 = memref.load %arg2[%310] : memref<32xf32, #tpu.memory_space<smem>>
    memref.store %309, %arg2[%310] : memref<32xf32, #tpu.memory_space<smem>>
    %c26_i32 = arith.constant 26 : i32
    %312 = arith.index_cast %c26_i32 : i32 to index
    %313 = memref.load %arg0[%312] : memref<32xi32, #tpu.memory_space<smem>>
    %c0_i32_178 = arith.constant 0 : i32
    %314 = arith.cmpi sge, %313, %c0_i32_178 : i32
    %c1000_i32_179 = arith.constant 1000 : i32
    %315 = arith.cmpi slt, %313, %c1000_i32_179 : i32
    %316 = arith.andi %314, %315 : i1
    %true_180 = arith.constant true
    %317 = arith.xori %316, %true_180 : i1
    %false_181 = arith.constant false
    %318 = arith.ori %false_181, %317 : i1
    %false_182 = arith.constant false
    %c1_i32_183 = arith.constant 1 : i32
    %c-1_i32_184 = arith.constant -1 : i32
    %319 = arith.select %false_182, %c-1_i32_184, %c1_i32_183 : i32
    %320 = arith.index_cast %313 : i32 to index
    %321 = memref.load %arg1[%320] : memref<1000xf32, #tpu.memory_space<smem>>
    %322 = arith.index_cast %c26_i32 : i32 to index
    %323 = memref.load %arg2[%322] : memref<32xf32, #tpu.memory_space<smem>>
    memref.store %321, %arg2[%322] : memref<32xf32, #tpu.memory_space<smem>>
    %c27_i32 = arith.constant 27 : i32
    %324 = arith.index_cast %c27_i32 : i32 to index
    %325 = memref.load %arg0[%324] : memref<32xi32, #tpu.memory_space<smem>>
    %c0_i32_185 = arith.constant 0 : i32
    %326 = arith.cmpi sge, %325, %c0_i32_185 : i32
    %c1000_i32_186 = arith.constant 1000 : i32
    %327 = arith.cmpi slt, %325, %c1000_i32_186 : i32
    %328 = arith.andi %326, %327 : i1
    %true_187 = arith.constant true
    %329 = arith.xori %328, %true_187 : i1
    %false_188 = arith.constant false
    %330 = arith.ori %false_188, %329 : i1
    %false_189 = arith.constant false
    %c1_i32_190 = arith.constant 1 : i32
    %c-1_i32_191 = arith.constant -1 : i32
    %331 = arith.select %false_189, %c-1_i32_191, %c1_i32_190 : i32
    %332 = arith.index_cast %325 : i32 to index
    %333 = memref.load %arg1[%332] : memref<1000xf32, #tpu.memory_space<smem>>
    %334 = arith.index_cast %c27_i32 : i32 to index
    %335 = memref.load %arg2[%334] : memref<32xf32, #tpu.memory_space<smem>>
    memref.store %333, %arg2[%334] : memref<32xf32, #tpu.memory_space<smem>>
    %c28_i32 = arith.constant 28 : i32
    %336 = arith.index_cast %c28_i32 : i32 to index
    %337 = memref.load %arg0[%336] : memref<32xi32, #tpu.memory_space<smem>>
    %c0_i32_192 = arith.constant 0 : i32
    %338 = arith.cmpi sge, %337, %c0_i32_192 : i32
    %c1000_i32_193 = arith.constant 1000 : i32
    %339 = arith.cmpi slt, %337, %c1000_i32_193 : i32
    %340 = arith.andi %338, %339 : i1
    %true_194 = arith.constant true
    %341 = arith.xori %340, %true_194 : i1
    %false_195 = arith.constant false
    %342 = arith.ori %false_195, %341 : i1
    %false_196 = arith.constant false
    %c1_i32_197 = arith.constant 1 : i32
    %c-1_i32_198 = arith.constant -1 : i32
    %343 = arith.select %false_196, %c-1_i32_198, %c1_i32_197 : i32
    %344 = arith.index_cast %337 : i32 to index
    %345 = memref.load %arg1[%344] : memref<1000xf32, #tpu.memory_space<smem>>
    %346 = arith.index_cast %c28_i32 : i32 to index
    %347 = memref.load %arg2[%346] : memref<32xf32, #tpu.memory_space<smem>>
    memref.store %345, %arg2[%346] : memref<32xf32, #tpu.memory_space<smem>>
    %c29_i32 = arith.constant 29 : i32
    %348 = arith.index_cast %c29_i32 : i32 to index
    %349 = memref.load %arg0[%348] : memref<32xi32, #tpu.memory_space<smem>>
    %c0_i32_199 = arith.constant 0 : i32
    %350 = arith.cmpi sge, %349, %c0_i32_199 : i32
    %c1000_i32_200 = arith.constant 1000 : i32
    %351 = arith.cmpi slt, %349, %c1000_i32_200 : i32
    %352 = arith.andi %350, %351 : i1
    %true_201 = arith.constant true
    %353 = arith.xori %352, %true_201 : i1
    %false_202 = arith.constant false
    %354 = arith.ori %false_202, %353 : i1
    %false_203 = arith.constant false
    %c1_i32_204 = arith.constant 1 : i32
    %c-1_i32_205 = arith.constant -1 : i32
    %355 = arith.select %false_203, %c-1_i32_205, %c1_i32_204 : i32
    %356 = arith.index_cast %349 : i32 to index
    %357 = memref.load %arg1[%356] : memref<1000xf32, #tpu.memory_space<smem>>
    %358 = arith.index_cast %c29_i32 : i32 to index
    %359 = memref.load %arg2[%358] : memref<32xf32, #tpu.memory_space<smem>>
    memref.store %357, %arg2[%358] : memref<32xf32, #tpu.memory_space<smem>>
    %c30_i32 = arith.constant 30 : i32
    %360 = arith.index_cast %c30_i32 : i32 to index
    %361 = memref.load %arg0[%360] : memref<32xi32, #tpu.memory_space<smem>>
    %c0_i32_206 = arith.constant 0 : i32
    %362 = arith.cmpi sge, %361, %c0_i32_206 : i32
    %c1000_i32_207 = arith.constant 1000 : i32
    %363 = arith.cmpi slt, %361, %c1000_i32_207 : i32
    %364 = arith.andi %362, %363 : i1
    %true_208 = arith.constant true
    %365 = arith.xori %364, %true_208 : i1
    %false_209 = arith.constant false
    %366 = arith.ori %false_209, %365 : i1
    %false_210 = arith.constant false
    %c1_i32_211 = arith.constant 1 : i32
    %c-1_i32_212 = arith.constant -1 : i32
    %367 = arith.select %false_210, %c-1_i32_212, %c1_i32_211 : i32
    %368 = arith.index_cast %361 : i32 to index
    %369 = memref.load %arg1[%368] : memref<1000xf32, #tpu.memory_space<smem>>
    %370 = arith.index_cast %c30_i32 : i32 to index
    %371 = memref.load %arg2[%370] : memref<32xf32, #tpu.memory_space<smem>>
    memref.store %369, %arg2[%370] : memref<32xf32, #tpu.memory_space<smem>>
    %c31_i32 = arith.constant 31 : i32
    %372 = arith.index_cast %c31_i32 : i32 to index
    %373 = memref.load %arg0[%372] : memref<32xi32, #tpu.memory_space<smem>>
    %c0_i32_213 = arith.constant 0 : i32
    %374 = arith.cmpi sge, %373, %c0_i32_213 : i32
    %c1000_i32_214 = arith.constant 1000 : i32
    %375 = arith.cmpi slt, %373, %c1000_i32_214 : i32
    %376 = arith.andi %374, %375 : i1
    %true_215 = arith.constant true
    %377 = arith.xori %376, %true_215 : i1
    %false_216 = arith.constant false
    %378 = arith.ori %false_216, %377 : i1
    %false_217 = arith.constant false
    %c1_i32_218 = arith.constant 1 : i32
    %c-1_i32_219 = arith.constant -1 : i32
    %379 = arith.select %false_217, %c-1_i32_219, %c1_i32_218 : i32
    %380 = arith.index_cast %373 : i32 to index
    %381 = memref.load %arg1[%380] : memref<1000xf32, #tpu.memory_space<smem>>
    %382 = arith.index_cast %c31_i32 : i32 to index
    %383 = memref.load %arg2[%382] : memref<32xf32, #tpu.memory_space<smem>>
    memref.store %381, %arg2[%382] : memref<32xf32, #tpu.memory_space<smem>>
    %c32_i32 = arith.constant 32 : i32
    return
  }
}

</mosaic_0001>

<bundles_post_ra>
// kernel: tpu_custom_call.1
= control target key start
LH: loop header
LB: loop body
LE: loop exit
PB: predicated region body
PF: predicated region fallthrough
CT: control target
= control target key end

     0   :  { %7 = vsyncpa [#allocation3], 0  ;;  %s300_s0 = inlined_call_operand.hbm [shape: s32[32], index: 0, kind: input, shape index: {}]   ;;  %s301_s1 = inlined_call_operand.hbm [shape: f32[1000], index: 1, kind: input, shape index: {}]   ;;  %s302_s2 = inlined_call_operand.hbm [shape: f32[32], index: 2, kind: output, shape index: {}]  }
   0x1   :  { %8 = vsyncpa [#allocation6], 0 }
   0x2   :  { %9 = vsyncpa [#allocation4], 0  ;;  %s210_s11 = scalar_lea.hbm %s300_s0, 16 }
   0x3   :  { %p211_p0 = scmp.ne.s32.totalorder %s300_s0, %s210_s11  ;;  %p214_p1 = scmp.lt.u32.totalorder %s210_s11, %s300_s0 }
   0x5   :  { %p216_p2 = pnand %p214_p1, %p211_p0 }
   0x7   :  { %219 = shalt.err (!%p216_p2)
}
   0x8   :  { %s246_s16 = smov [#allocation2]   ;;  %s220_s21 = scalar_lea.hbm %s301_s1, 128 }
   0x9   :  { %17 = dma.hbm_to_smem %s300_s0, 16, %s246_s16, [#allocation3]  }
   0xa   :  { %p221_p3 = scmp.ne.s32.totalorder %s301_s1, %s220_s21  ;;  %p224_p4 = scmp.lt.u32.totalorder %s220_s21, %s301_s1 }
   0xc   :  { %p226_p5 = pnand %p224_p4, %p221_p3 }
   0xe   :  { %229 = shalt.err (!%p226_p5)
}
   0xf   :  { %s247_s26 = smov [#allocation5]  }
  0x10   :  { %25 = dma.hbm_to_smem %s301_s1, 128, %s247_s26, [#allocation6]  }
  0x11   :  { %240 = dma.done.wait [#allocation3], 16  }
  0x12   :  { %241 = vsyncadd [#allocation3], 4294967280 }
  0x13   :  { %242 = dma.done.wait [#allocation6], 128  }
  0x14   :  { %243 = vsyncadd [#allocation6], 4294967168 }
  0x15   :  { %32 = sfence }
  0x16   :  { %s33_s0 = sld [smem:[#allocation2]]  ;;  %s176_s29 = sld [smem:[#allocation2 + $0x1]] }
  0x17   :  { %s177_s30 = sld [smem:[#allocation2 + $0x2]]  ;;  %s178_s3 = sld [smem:[#allocation2 + $0x3]] }
  0x18   :  { %s179_s4 = sld [smem:[#allocation2 + $0x4]]  ;;  %s180_s5 = sld [smem:[#allocation2 + $0x5]] }
  0x19   :  { %s181_s6 = sld [smem:[#allocation2 + $0x6]]  ;;  %s182_s7 = sld [smem:[#allocation2 + $0x7]] }
  0x1a   :  { %s183_s8 = sld [smem:[#allocation2 + $0x8]]  ;;  %s184_s9 = sld [smem:[#allocation2 + $0x9]] }
  0x1b   :  { %s185_s10 = sld [smem:[#allocation2 + $0xa]]  ;;  %s186_s11 = sld [smem:[#allocation2 + $0xb]] }
  0x1c   :  { %s34_s12 = sld [smem:[#allocation5 + %s33_s0]] }
  0x1d   :  { %s38_s13 = sld [smem:[#allocation5 + %s176_s29]] }
  0x1e   :  { %s42_s1 = sld [smem:[#allocation5 + %s177_s30]] }
  0x1f   :  { %s46_s14 = sld [smem:[#allocation5 + %s178_s3]] }
  0x20   :  { %s50_s15 = sld [smem:[#allocation5 + %s179_s4]] }
  0x21   :  { %s54_s16 = sld [smem:[#allocation5 + %s180_s5]] }
  0x22   :  { %s58_s17 = sld [smem:[#allocation5 + %s181_s6]] }
  0x23   :  { %s62_s18 = sld [smem:[#allocation5 + %s182_s7]] }
  0x24   :  { %s66_s19 = sld [smem:[#allocation5 + %s183_s8]] }
  0x25   :  { %s70_s20 = sld [smem:[#allocation5 + %s184_s9]] }
  0x26   :  { %s74_s21 = sld [smem:[#allocation5 + %s185_s10]] }
  0x27   :  { %s78_s22 = sld [smem:[#allocation5 + %s186_s11]] }
  0x28   :  { %36 = sst [smem:[#allocation7]] %s34_s12  ;;  %s187_s23 = sld [smem:[#allocation2 + $0xc]] }
  0x29   :  { %40 = sst [smem:[#allocation7 + $0x1]] %s38_s13  ;;  %s188_s24 = sld [smem:[#allocation2 + $0xd]] }
  0x2a   :  { %44 = sst [smem:[#allocation7 + $0x2]] %s42_s1  ;;  %s189_s25 = sld [smem:[#allocation2 + $0xe]] }
  0x2b   :  { %48 = sst [smem:[#allocation7 + $0x3]] %s46_s14  ;;  %s190_s26 = sld [smem:[#allocation2 + $0xf]] }
  0x2c   :  { %52 = sst [smem:[#allocation7 + $0x4]] %s50_s15  ;;  %s191_s27 = sld [smem:[#allocation2 + $0x10]] }
  0x2d   :  { %56 = sst [smem:[#allocation7 + $0x5]] %s54_s16  ;;  %s192_s28 = sld [smem:[#allocation2 + $0x11]] }
  0x2e   :  { %60 = sst [smem:[#allocation7 + $0x6]] %s58_s17  ;;  %s193_s6 = sld [smem:[#allocation2 + $0x12]] }
  0x2f   :  { %s82_s0 = sld [smem:[#allocation5 + %s187_s23]] }
  0x30   :  { %64 = sst [smem:[#allocation7 + $0x7]] %s62_s18  ;;  %s194_s7 = sld [smem:[#allocation2 + $0x13]] }
  0x31   :  { %s86_s29 = sld [smem:[#allocation5 + %s188_s24]] }
  0x32   :  { %68 = sst [smem:[#allocation7 + $0x8]] %s66_s19  ;;  %s195_s8 = sld [smem:[#allocation2 + $0x14]] }
  0x33   :  { %s90_s30 = sld [smem:[#allocation5 + %s189_s25]] }
  0x34   :  { %72 = sst [smem:[#allocation7 + $0x9]] %s70_s20  ;;  %s196_s9 = sld [smem:[#allocation2 + $0x15]] }
  0x35   :  { %s94_s3 = sld [smem:[#allocation5 + %s190_s26]] }
  0x36   :  { %76 = sst [smem:[#allocation7 + $0xa]] %s74_s21  ;;  %s197_s10 = sld [smem:[#allocation2 + $0x16]] }
  0x37   :  { %s98_s4 = sld [smem:[#allocation5 + %s191_s27]] }
  0x38   :  { %80 = sst [smem:[#allocation7 + $0xb]] %s78_s22  ;;  %s198_s11 = sld [smem:[#allocation2 + $0x17]] }
  0x39   :  { %s102_s5 = sld [smem:[#allocation5 + %s192_s28]] }
  0x3a   :  { %84 = sst [smem:[#allocation7 + $0xc]] %s82_s0  ;;  %s199_s13 = sld [smem:[#allocation2 + $0x18]] }
  0x3b   :  { %88 = sst [smem:[#allocation7 + $0xd]] %s86_s29  ;;  %s200_s14 = sld [smem:[#allocation2 + $0x19]] }
  0x3c   :  { %92 = sst [smem:[#allocation7 + $0xe]] %s90_s30  ;;  %s201_s16 = sld [smem:[#allocation2 + $0x1a]] }
  0x3d   :  { %96 = sst [smem:[#allocation7 + $0xf]] %s94_s3  ;;  %s202_s18 = sld [smem:[#allocation2 + $0x1b]] }
  0x3e   :  { %100 = sst [smem:[#allocation7 + $0x10]] %s98_s4  ;;  %s203_s20 = sld [smem:[#allocation2 + $0x1c]] }
  0x3f   :  { %104 = sst [smem:[#allocation7 + $0x11]] %s102_s5  ;;  %s204_s22 = sld [smem:[#allocation2 + $0x1d]] }
  0x40   :  { %s106_s12 = sld [smem:[#allocation5 + %s193_s6]]  ;;  %s230_s6 = scalar_lea.hbm %s302_s2, 16 }
  0x41   :  { %s110_s1 = sld [smem:[#allocation5 + %s194_s7]]  ;;  %p231_p6 = scmp.ne.s32.totalorder %s302_s2, %s230_s6 }
  0x42   :  { %s114_s15 = sld [smem:[#allocation5 + %s195_s8]]  ;;  %p234_p7 = scmp.lt.u32.totalorder %s230_s6, %s302_s2 }
  0x43   :  { %s118_s17 = sld [smem:[#allocation5 + %s196_s9]] }
  0x44   :  { %s122_s19 = sld [smem:[#allocation5 + %s197_s10]]  ;;  %p236_p8 = pnand %p234_p7, %p231_p6 }
  0x45   :  { %s126_s21 = sld [smem:[#allocation5 + %s198_s11]] }
  0x46   :  { %108 = sst [smem:[#allocation7 + $0x12]] %s106_s12  ;;  %s205_s0 = sld [smem:[#allocation2 + $0x1e]] }
  0x47   :  { %s130_s23 = sld [smem:[#allocation5 + %s199_s13]] }
  0x48   :  { %112 = sst [smem:[#allocation7 + $0x13]] %s110_s1  ;;  %s206_s29 = sld [smem:[#allocation2 + $0x1f]] }
  0x49   :  { %s134_s24 = sld [smem:[#allocation5 + %s200_s14]] }
  0x4a   :  { %116 = sst [smem:[#allocation7 + $0x14]] %s114_s15 }
  0x4b   :  { %s138_s25 = sld [smem:[#allocation5 + %s201_s16]] }
  0x4c   :  { %120 = sst [smem:[#allocation7 + $0x15]] %s118_s17 }
  0x4d   :  { %s142_s26 = sld [smem:[#allocation5 + %s202_s18]] }
  0x4e   :  { %124 = sst [smem:[#allocation7 + $0x16]] %s122_s19 }
  0x4f   :  { %s146_s27 = sld [smem:[#allocation5 + %s203_s20]] }
  0x50   :  { %128 = sst [smem:[#allocation7 + $0x17]] %s126_s21 }
  0x51   :  { %s150_s28 = sld [smem:[#allocation5 + %s204_s22]] }
  0x52   :  { %132 = sst [smem:[#allocation7 + $0x18]] %s130_s23 }
  0x53   :  { %136 = sst [smem:[#allocation7 + $0x19]] %s134_s24 }
  0x54   :  { %140 = sst [smem:[#allocation7 + $0x1a]] %s138_s25 }
  0x55   :  { %144 = sst [smem:[#allocation7 + $0x1b]] %s142_s26 }
  0x56   :  { %148 = sst [smem:[#allocation7 + $0x1c]] %s146_s27 }
  0x57   :  { %152 = sst [smem:[#allocation7 + $0x1d]] %s150_s28 }
  0x58   :  { %s154_s30 = sld [smem:[#allocation5 + %s205_s0]] }
  0x59   :  { %s158_s3 = sld [smem:[#allocation5 + %s206_s29]] }
  0x5e   :  { %156 = sst [smem:[#allocation7 + $0x1e]] %s154_s30 }
  0x5f   :  { %160 = sst [smem:[#allocation7 + $0x1f]] %s158_s3 }
  0x60   :  { %239 = shalt.err (!%p236_p8)
}
  0x61   :  { %s248_s11 = smov [#allocation7]  }
  0x62   :  { %168 = dma.smem_to_hbm %s248_s11, 16, %s302_s2, [#allocation4]  }
  0x63   :  { %244 = dma.done.wait [#allocation4], 16  }
  0x64   :  { %245 = vsyncadd [#allocation4], 4294967280 }
  0x65   :  { %172 = sfence }
  0x66   :  { %173 = vsyncpa [#allocation3], 1 }
  0x67   :  { %174 = vsyncpa [#allocation6], 1 }
  0x68   :  { %175 = vsyncpa [#allocation4], 1 }

</bundles_post_ra>
